<compile_context>
chip_gen: v7x
topology: tpu7x:2x2x1
jax: 0.10.0
libtpu: 0.0.40
codegen_flags: <defaults>
</compile_context>

<pallas_src>
import jax
import jax.numpy as jnp
from jax import lax
from jax.experimental import pallas as pl
from jax.experimental.pallas import tpu as pltpu


def _round_up(x, m):
    return (x + m - 1) // m * m


def _w2v_kernel(ids_ref, embed_hbm, w_ref, out_ref, hidden_ref, row_sem):
    # ids_ref   : (Bp,)    int32  SMEM (scalar-prefetched token ids)
    # embed_hbm : (V, E)   f32    HBM  (full embedding table, never VMEM-resident)
    # w_ref     : (tv, E)  bf16   VMEM expand-weight tile (vocab-major, no transpose)
    # out_ref   : (tb, tv) f32    VMEM logits tile
    # hidden_ref: (tb, E)  f32    VMEM scratch: gathered embeddings for this batch tile
    # row_sem   : DMA semaphore for the row-gather copies
    i = pl.program_id(0)
    tb, _ = hidden_ref.shape

    # Gather the tb embedding rows exactly once per batch tile; the scratch
    # persists across the inner ("arbitrary") vocab axis.
    @pl.when(pl.program_id(1) == 0)
    def _gather():
        def start(r, carry):
            tok = ids_ref[i * tb + r]
            pltpu.make_async_copy(embed_hbm.at[pl.ds(tok, 1), :],
                                  hidden_ref.at[pl.ds(r, 1), :],
                                  row_sem).start()
            return carry
        lax.fori_loop(0, tb, start, 0)

        def wait(r, carry):
            pltpu.make_async_copy(embed_hbm.at[pl.ds(0, 1), :],
                                  hidden_ref.at[pl.ds(r, 1), :],
                                  row_sem).wait()
            return carry
        lax.fori_loop(0, tb, wait, 0)

    # expand: logits_tile = hidden @ W_tile.T (contract E with E, vocab on lanes).
    hidden = hidden_ref[...].astype(w_ref.dtype)
    out_ref[...] = lax.dot_general(
        hidden, w_ref[...],
        dimension_numbers=(((1,), (1,)), ((), ())),
        preferred_element_type=jnp.float32)


def word2vec_forward(token_ids, embed_weight, expand_weight, *,
                     tb=128, tv=512, weight_dtype=jnp.bfloat16):
    """token_ids: (B,) int; embed_weight: (V, E); expand_weight: (V, E).

    Returns logits of shape (B, V), matching PyTorch Word2Vec.forward
    (expand weight is computed in `weight_dtype`, accumulated in f32).
    """
    B = token_ids.shape[0]
    V, E = embed_weight.shape
    assert expand_weight.shape == (V, E)

    tb = min(tb, _round_up(B, 8))
    tv = min(tv, _round_up(V, 128))
    Bp = _round_up(B, tb)
    Vp = _round_up(V, tv)

    # Clamp ids (so the row DMA can never go out of bounds) and pad the batch.
    ids = jnp.clip(token_ids.astype(jnp.int32), 0, V - 1)
    ids = jnp.pad(ids, (0, Bp - B))

    embed_weight = embed_weight.astype(jnp.float32)
    # Pad the vocab axis and cast the (memory-bound) expand weight. No transpose.
    w = jnp.pad(expand_weight.astype(weight_dtype), ((0, Vp - V), (0, 0)))

    grid = (Bp // tb, Vp // tv)
    w_bytes = jnp.dtype(weight_dtype).itemsize
    cost = pl.CostEstimate(
        flops=2 * Bp * Vp * E,
        transcendentals=0,
        bytes_accessed=Bp * E * 4 + grid[0] * Vp * E * w_bytes + Bp * Vp * 4)

    out = pl.pallas_call(
        _w2v_kernel,
        out_shape=jax.ShapeDtypeStruct((Bp, Vp), jnp.float32),
        grid_spec=pltpu.PrefetchScalarGridSpec(
            num_scalar_prefetch=1,                                 # ids -> SMEM
            grid=grid,
            in_specs=[
                pl.BlockSpec(memory_space=pl.ANY),                 # embed table in HBM
                pl.BlockSpec((tv, E), lambda i, j, ids: (j, 0)),   # weight tile
            ],
            out_specs=pl.BlockSpec((tb, tv), lambda i, j, ids: (i, j)),
            scratch_shapes=[
                pltpu.VMEM((tb, E), jnp.float32),                  # gathered hidden
                pltpu.SemaphoreType.DMA,                           # row-gather sem
            ]),
        compiler_params=pltpu.CompilerParams(
            dimension_semantics=("parallel", "arbitrary")),        # batch || , vocab carries scratch
        cost_estimate=cost,
    )(ids, embed_weight, w)

    return out[:B, :V]


if __name__ == "__main__":
    # Small, module-consistent shapes (non-multiple vocab exercises the padding path).
    vocab_size = 1000
    embedding_size = 256
    batch = 128

    key = jax.random.PRNGKey(0)
    k_emb, k_exp, k_ids = jax.random.split(key, 3)

    embed_weight = jax.random.normal(k_emb, (vocab_size, embedding_size),
                                     dtype=jnp.float32)
    expand_weight = jax.random.normal(k_exp, (vocab_size, embedding_size),
                                      dtype=jnp.float32) * 0.05
    token_ids = jax.random.randint(k_ids, (batch,), 0, vocab_size, dtype=jnp.int32)

    logits = word2vec_forward(token_ids, embed_weight, expand_weight)
    logits = jax.block_until_ready(logits)

    # Pure-JAX reference of the PyTorch forward (matching the bf16 weight path).
    hidden = jnp.take(embed_weight, token_ids, axis=0)
    ref = jnp.dot(hidden.astype(jnp.bfloat16),
                  expand_weight.astype(jnp.bfloat16).T,
                  preferred_element_type=jnp.float32)

    assert logits.shape == (batch, vocab_size)
    assert jnp.allclose(logits, ref, atol=2e-2, rtol=2e-2), \
        float(jnp.max(jnp.abs(logits - ref)))

    print("KERNEL_OK")
</pallas_src>

<mosaic_0001>
module attributes {stable_mosaic.version = 11 : i64} {
  func.func @_w2v_kernel(%arg0: i32, %arg1: i32, %arg2: memref<128xi32, #tpu.memory_space<smem>>, %arg3: memref<1000x256xf32, #tpu.memory_space<any>>, %arg4: memref<512x256xbf16, #tpu.memory_space<vmem>>, %arg5: memref<128x512xf32, #tpu.memory_space<vmem>>, %arg6: memref<128x256xf32, #tpu.memory_space<vmem>>, %arg7: memref<!tpu.dma_semaphore, #tpu.memory_space<semaphore_mem>>) attributes {dimension_semantics = [#tpu.dimension_semantics<parallel>, #tpu.dimension_semantics<arbitrary>], iteration_bounds = array<i64: 1, 2>, scalar_prefetch = 1 : i64, scratch_operands = 2 : i64, tpu.core_type = #tpu.core_type<tc>, window_params = [{}, {transform_indices = @transform_1, window_bounds = array<i64: 512, 256>}, {transform_indices = @transform_2, window_bounds = array<i64: 128, 512>}]} {
    %c0_i32 = arith.constant 0 : i32
    %0 = arith.cmpi eq, %arg1, %c0_i32 : i32
    %1 = arith.extui %0 : i1 to i32
    %c0_i32_0 = arith.constant 0 : i32
    %2 = arith.cmpi ne, %1, %c0_i32_0 : i32
    scf.if %2 {
      %c0_i32_6 = arith.constant 0 : i32
      %c128_i32 = arith.constant 128 : i32
      %8 = arith.addi %c0_i32_6, %c128_i32 : i32
      %c1_i32 = arith.constant 1 : i32
      scf.for %arg8 = %c0_i32_6 to %8 step %c1_i32  : i32 {
        %c128_i32_12 = arith.constant 128 : i32
        %10 = arith.muli %arg0, %c128_i32_12 : i32
        %11 = arith.addi %10, %arg8 : i32
        %12 = arith.index_cast %11 : i32 to index
        %13 = memref.load %arg2[%12] : memref<128xi32, #tpu.memory_space<smem>>
        %c0_i32_13 = arith.constant 0 : i32
        %14 = tpu.memref_slice %arg3[%13, %c0_i32_13] : memref<1000x256xf32, #tpu.memory_space<any>> -> memref<1x256xf32, #tpu.memory_space<any>>
        %c0_i32_14 = arith.constant 0 : i32
        %15 = tpu.memref_slice %arg6[%arg8, %c0_i32_14] : memref<128x256xf32, #tpu.memory_space<vmem>> -> memref<1x256xf32, #tpu.memory_space<vmem>>
        tpu.enqueue_dma source(%14 : memref<1x256xf32, #tpu.memory_space<any>>) target(%15 : memref<1x256xf32, #tpu.memory_space<vmem>>) target_semaphore(%arg7 : memref<!tpu.dma_semaphore, #tpu.memory_space<semaphore_mem>>)
      }
      %c128_i32_7 = arith.constant 128 : i32
      %c0_i32_8 = arith.constant 0 : i32
      %c128_i32_9 = arith.constant 128 : i32
      %9 = arith.addi %c0_i32_8, %c128_i32_9 : i32
      %c1_i32_10 = arith.constant 1 : i32
      scf.for %arg8 = %c0_i32_8 to %9 step %c1_i32_10  : i32 {
        %c0_i32_12 = arith.constant 0 : i32
        %c0_i32_13 = arith.constant 0 : i32
        %10 = tpu.memref_slice %arg3[%c0_i32_12, %c0_i32_13] : memref<1000x256xf32, #tpu.memory_space<any>> -> memref<1x256xf32, #tpu.memory_space<any>>
        %c0_i32_14 = arith.constant 0 : i32
        %11 = tpu.memref_slice %arg6[%arg8, %c0_i32_14] : memref<128x256xf32, #tpu.memory_space<vmem>> -> memref<1x256xf32, #tpu.memory_space<vmem>>
        tpu.wait_dma2 semaphore(%arg7 : memref<!tpu.dma_semaphore, #tpu.memory_space<semaphore_mem>>) src(%10 : memref<1x256xf32, #tpu.memory_space<any>>) dst(%11 : memref<1x256xf32, #tpu.memory_space<vmem>>)
      }
      %c128_i32_11 = arith.constant 128 : i32
    } else {
    }
    %c0 = arith.constant 0 : index
    %c0_1 = arith.constant 0 : index
    %3 = vector.load %arg6[%c0, %c0_1] : memref<128x256xf32, #tpu.memory_space<vmem>>, vector<128x256xf32>
    %4 = arith.truncf %3 : vector<128x256xf32> to vector<128x256xbf16>
    %c0_2 = arith.constant 0 : index
    %c0_3 = arith.constant 0 : index
    %5 = vector.load %arg4[%c0_2, %c0_3] : memref<512x256xbf16, #tpu.memory_space<vmem>>, vector<512x256xbf16>
    %cst = arith.constant dense<0.000000e+00> : vector<128x512xf32>
    %6 = tpu.matmul %4, %5, %cst {dimension_numbers = #tpu.dot_dimension_numbers<[1], [1], [0], [0], [0, 0, 1, 0], [], []>} : vector<128x256xbf16>, vector<512x256xbf16>, vector<128x512xf32> -> vector<128x512xf32>
    %c0_4 = arith.constant 0 : index
    %c0_5 = arith.constant 0 : index
    %7 = vector.load %arg5[%c0_4, %c0_5] : memref<128x512xf32, #tpu.memory_space<vmem>>, vector<128x512xf32>
    tpu.vector_store %arg5[%c0_4, %c0_5], %6 {strides = array<i32>} : memref<128x512xf32, #tpu.memory_space<vmem>>, vector<128x512xf32>,
    return
  }
  func.func @transform_1(%arg0: i32, %arg1: i32, %arg2: memref<128xi32, #tpu.memory_space<smem>>) -> (i32, i32) {
    %c0_i32 = arith.constant 0 : i32
    %c0_i32_0 = arith.constant 0 : i32
    return %arg1, %c0_i32 : i32, i32
  }
  func.func @transform_2(%arg0: i32, %arg1: i32, %arg2: memref<128xi32, #tpu.memory_space<smem>>) -> (i32, i32) {
    %c0_i32 = arith.constant 0 : i32
    return %arg0, %arg1 : i32, i32
  }
}

</mosaic_0001>

<bundles_post_ra>
// kernel: tpu_custom_call.1
= control target key start
LH: loop header
LB: loop body
LE: loop exit
PB: predicated region body
PF: predicated region fallthrough
CT: control target
= control target key end

     0   :  { %s1859_s0 = inlined_call_operand.hbm [shape: s32[128], index: 0, kind: input, shape index: {}]   ;;  %s1860_s1 = inlined_call_operand.hbm [shape: f32[1000,256], index: 1, kind: input, shape index: {}]   ;;  %s1861_s2 = inlined_call_operand.hbm [shape: bf16[1024,256], index: 2, kind: input, shape index: {}]   ;;  %s1862_s3 = inlined_call_operand.hbm [shape: f32[128,1024], index: 3, kind: output, shape index: {}]  }
   0x1   :  { %1866 = sst [smem:[#allocation18_spill]] %s1861_s2  ;;  %s1313_s14 = scalar_lea.hbm %s1859_s0, 16 }
   0x2   :  { %p1314_p0 = scmp.ne.s32.totalorder %s1859_s0, %s1313_s14  ;;  %p1317_p1 = scmp.lt.u32.totalorder %s1313_s14, %s1859_s0 }
   0x4   :  { %p1319_p2 = pnand %p1317_p1, %p1314_p0 }
   0x6   :  { %1322 = shalt.err (!%p1319_p2)  }
   0x7   :  { %s1481_s19 = smov [#allocation5]  }
   0x8   :  { %9 = dma.hbm_to_smem %s1859_s0, 16, %s1481_s19, [#allocation4] }
   0x9   :  { %1437 = dma.done.wait [#allocation4], 16 }
   0xa   :  { %1438 = vsyncadd [#allocation4], 4294967280 }
   0xb   :  { %11 = sfence }
   0xc   :  { %12 = vsyncpa [#allocation7], 0 }
   0xd   :  { %14 = vsyncpa [#allocation7 + $0x1], 0 }
   0xe   :  { %15 = vsyncpa [#allocation8], 0 }
   0xf   :  { %17 = vsyncpa [#allocation8 + $0x1], 0  ;;  %s1524_s22 = smov 0   ;;  %s1526_s23 = smov 0  }
  0x10   :  { %s1528_s24 = smov 0   ;;  %s1530_s25 = smov 0  }
  0x11   :  { %s1532_s26 = smov 0   ;;  %s1534_s27 = smov 0  }
  0x12 LB: > { %1867 = sst [smem:[#allocation15_spill]] %s1467_s26  ;;  %s1043_s0 = sadd.s32 4294967295, %s1471_s27   ;;  %s1471_s27 = sphi %s1534_s27, %s23_s27   ;;  %s1467_s26 = sphi %s1532_s26, %s1882_s26   ;;  %s1463_s25 = sphi %s1530_s25, %s1881_s25   ;;  %s1459_s24 = sphi %s1528_s24, %s1885_s24   ;;  %s1455_s23 = sphi %s1526_s23, %s1884_s23   ;;  %s1451_s22 = sphi %s1524_s22, %s1883_s22  }
  0x13   : > { %s1044_s28 = sadd.s32 4294967294, %s1471_s27   ;;  %s32_s29 = sadd.s32 1, %s1467_s26 }
  0x14   : > { %s42_s30 = sadd.s32 1, %s1459_s24  ;;  %p33_p3 = scmp.ge.s32.totalorder %s32_s29, 2 }
  0x15   : > { %p49_p4 = scmp.ne.s32.totalorder %s1459_s24, %s1455_s23  ;;  %p50_p5 = scmp.eq.s32.totalorder %s1471_s27, 0 }
  0x16   : > { %p55_p6 = scmp.ne.s32.totalorder %s1455_s23, %s1451_s22  ;;  %s1887_s29 = smov (%p33_p3, %s32_s29), 0 }
  0x17   : > { %1868 = sst [smem:[#allocation16_spill]] %s1887_s29  ;;  %p1565_p7 = por %p50_p5, %p49_p4 }
  0x18   : > { %p56_p8 = scmp.eq.s32.totalorder %s1043_s0, 0  ;;  %s39_s5 = ssub.s32 %s1467_s26, %s1887_s29 }
  0x19   : > { %p81_p9 = scmp.eq.s32.totalorder %s1043_s0, 1  ;;  %p40_p10 = scmp.eq.s32.totalorder %s39_s5, 0 }
  0x1a   : > { %p1571_p11 = por %p56_p8, %p55_p6  ;;  %p87_p13 = scmp.eq.s32.totalorder %s1044_s28, 1 }
  0x1b   : > { %p1575_p12 = por %p81_p9, %p49_p4  ;;  %p1143_p2 = scmp.lt.s32.totalorder %s1471_s27, 2 }
  0x1c   : > { %s1580_s8 = scalar_select %p40_p10, %s1459_s24, %s42_s30  }
  0x1d   : > { %s1871_s7 = scalar_select %p1575_p12, 1, 0 }
  0x1e   : > { %1872 = sst [smem:[#allocation17_spill]] %s1580_s8  ;;  %p1582_p0 = por %p87_p13, %p55_p6 }
  0x1f   : > { %s107_s10 = sand.u32 1, %s1459_s24   ;;  %s1129_s12 = sshll.u32 %s1467_s26, 13 }
  0x20   : > { %s1873_s9 = scalar_select %p1582_p0, 1, 0 }
  0x21   : > { %s1047_s11 = sshll.u32 %s107_s10, 9  ;;  %s1874_s2 = sld [smem:[#allocation18_spill]] }
  0x22   : > { %s111_s16 = scalar_lea.vmem [#allocation6], %s1047_s11  ;;  %p1599_p3 = pnand %p1143_p2, %p1565_p7 }
  0x23   : > { %s119_s17 = sshll.u32 %s111_s16, 4  ;;  %s1604_s19 = scalar_lea.sflag [#allocation7], %s107_s10  ;;  %s1595_s17 = int_to_ptr.vmem [resolvable:$true] %s119_s17 }
  0x24   : > { %p1325_p6 = pneg %p1599_p3 }
  0x27   : > { %s1593_s15 = scalar_lea.hbm %s1874_s2, %s1129_s12  ;;  %s1328_s28 = scalar_lea.hbm %s1874_s2, 16384 }
  0x28   : > { %s1323_s20 = scalar_lea.hbm %s1593_s15, 8192  ;;  %p1329_p7 = scmp.lt.u32.totalorder %s1593_s15, %s1874_s2 }
  0x29   : > { %p1324_p5 = scmp.ne.s32.totalorder %s1593_s15, %s1323_s20  ;;  %p1330_p10 = scmp.lt.u32.totalorder %s1328_s28, %s1323_s20 }
  0x2a   : > { %p1332_p2 = scmp.lt.u32.totalorder %s1323_s20, %s1593_s15 }
  0x2b   : > { %p1326_p8 = pnand %p1325_p6, %p1324_p5  ;;  %p1331_p13 = por %p1330_p10, %p1329_p7 }
  0x2d   : > { %p1327_p9 = pneg %p1326_p8  ;;  %p1333_p1 = por %p1332_p2, %p1331_p13 }
  0x2f   : > { %p1334_p4 = pnand %p1333_p1, %p1327_p9 }
  0x31   : > { %1337 = shalt.err (!%p1334_p4)
}
  0x32   : > { %s1338_s5 = scalar_lea.vmem %s1595_s17, 8192  ;;  %s1482_s10 = smov [#allocation6]  }
  0x33   : > { %p1339_p5 = scmp.ne.s32.totalorder %s1595_s17, %s1338_s5  ;;  %s1343_s11 = sshll.u32 %s1482_s10, 4  ;;  %s1344_s11 = int_to_ptr.vmem [resolvable:$false] %s1343_s11 }
  0x34   : > { %s1345_s12 = scalar_lea.vmem %s1344_s11, 16384  ;;  %p1346_p12 = scmp.lt.s32.totalorder %s1595_s17, %s1344_s11 }
  0x35   : > { %p1341_p8 = pnand %p1339_p5, %p1325_p6  ;;  %p1347_p7 = scmp.lt.s32.totalorder %s1345_s12, %s1338_s5 }
  0x37   : > { %p1342_p0 = pneg %p1341_p8  ;;  %p1348_p10 = por %p1347_p7, %p1346_p12 }
  0x39   : > { %p1349_p13 = pnand %p1348_p10, %p1342_p0 }
  0x3b   : > { %1352 = shalt.err (!%p1349_p13)
}
  0x3c   : > { %s1483_s13 = smov 128   ;;  %s1484_s14 = smov 8  }
  0x3d   : > { %1138 = dma.hbm_to_vmem [thread:$0]  (!%p1599_p3), %s1593_s15, 8192, %s1595_s17, %s1604_s19, %s1483_s13, %s1483_s13, %s1484_s14  }
  0x3e   : > { %p127_p1 = scmp.lt.s32.totalorder %s1471_s27, 3  ;;  %p1876_p4 = scmp.ge.s32.totalorder %s1471_s27, 1 }
  0x40   : > { %p128_p6 = pnand %p1876_p4, %p127_p1 }
  0x41   : > { %s1636_s16 = sand.u32 (!%p128_p6), 1, %s1455_s23  }
  0x42   : > { %131 = sbr.rel (%p128_p6) target bundleno = 554 (0x22a), region = 24  ;;  %s1052_s20 = sshll.u32 (!%p128_p6), %s1636_s16, 9 }
  0x43   : > { %s134_s21 = scalar_lea.sflag (!%p128_p6), [#allocation7], %s1636_s16  ;;  %s1640_s0 = scalar_lea.vmem (!%p128_p6), [#allocation6], %s1052_s20 }
  0x49   : > { %1440 = dma.done.wait (%p1571_p11), %s134_s21, 8192  }
  0x4a   : > { %1442 = vsyncadd (%p1571_p11), %s134_s21, 4294959104  ;;  %s1646_s15 = scalar_lea.vmem [#allocation9], %s1052_s20  ;;  %p1054_p12 = scmp.ne.s32.totalorder %s1463_s25, 0 }
  0x4b   : > { %s1649_s17 = smov (!%p1054_p12), 0  }
  0x4c   : > { %162 = sbr.rel (%p1054_p12) target bundleno = 137 (0x89), region = 32 }
  0x53 LB: >> { %s171_s18 = sld [smem:[#allocation5 + %s1475_s17]]  ;;  %s178_s19 = sshrl.u32 %s1475_s17, 3  ;;  %s1475_s17 = sphi %s1649_s17, %s168_s17  }
  0x54   : >> { %s179_s28 = sand.u32 7, %s1475_s17   ;;  %s1057_s6 = sshll.u32 %s178_s19, 4 }
  0x55   : >> { %s181_s30 = sadd.s32 %s1057_s6, %s179_s28  ;;  %s1355_s19 = scalar_lea.hbm %s1860_s1, 32000 }
  0x56   : >> { %s182_s4 = scalar_lea.vmem [#allocation2], %s181_s30 }
  0x57   : >> { %s184_s5 = sshll.u32 %s182_s4, 4  ;;  %s1657_s5 = int_to_ptr.vmem [resolvable:$true] %s184_s5 }
  0x59   : >> { %s172_s10 = sshrl.u32 %s171_s18, 3  ;;  %s173_s11 = sand.u32 7, %s171_s18  }
  0x5a   : >> { %s1055_s12 = sshll.u32 %s172_s10, 4 }
  0x5b   : >> { %s175_s13 = sadd.s32 %s1055_s12, %s173_s11 }
  0x5c   : >> { %s1056_s14 = sshll.u32 %s175_s13, 4 }
  0x5d   : >> { %s177_s2 = scalar_lea.hbm %s1860_s1, %s1056_s14 }
  0x5e   : >> { %s1353_s29 = scalar_lea.hbm %s177_s2, 32  ;;  %p1356_p0 = scmp.lt.u32.totalorder %s177_s2, %s1860_s1 }
  0x5f   : >> { %p1354_p11 = scmp.ne.s32.totalorder %s177_s2, %s1353_s29  ;;  %p1357_p3 = scmp.lt.u32.totalorder %s1355_s19, %s1353_s29 }
  0x60   : >> { %p1359_p2 = scmp.lt.u32.totalorder %s1353_s29, %s177_s2 }
  0x61   : >> { %p1358_p9 = por %p1357_p3, %p1356_p0 }
  0x63   : >> { %p1360_p5 = por %p1359_p2, %p1358_p9 }
  0x65   : >> { %p1361_p8 = pnand %p1360_p5, %p1354_p11 }
  0x67   : >> { %1364 = shalt.err (!%p1361_p8)  }
  0x68   : >> { %s1365_s18 = scalar_lea.vmem %s1657_s5, 32  ;;  %s1485_s30 = smov [#allocation2]  }
  0x69   : >> { %p1366_p7 = scmp.ne.s32.totalorder %s1657_s5, %s1365_s18  ;;  %s1367_s4 = sshll.u32 %s1485_s30, 4  ;;  %s1368_s4 = int_to_ptr.vmem [resolvable:$false] %s1367_s4 }
  0x6a   : >> { %s1369_s26 = scalar_lea.vmem %s1368_s4, 4096  ;;  %p1370_p10 = scmp.lt.s32.totalorder %s1657_s5, %s1368_s4 }
  0x6b   : >> { %p1371_p13 = scmp.lt.s32.totalorder %s1369_s26, %s1365_s18 }
  0x6d   : >> { %p1372_p1 = por %p1371_p13, %p1370_p10 }
  0x6f   : >> { %p1373_p4 = pnand %p1372_p1, %p1366_p7 }
  0x71   : >> { %1376 = shalt.err (!%p1373_p4)  }
  0x72   : >> { %s1486_s8 = smov 128   ;;  %s1487_s29 = smov 1  }
  0x73   : >> { %187 = dma.hbm_to_vmem [thread:$0]  %s177_s2, 32, %s1657_s5, [#allocation3], %s1486_s8, %s1486_s8, %s1487_s29 }
  0x74   : >> { %s168_s17 = sadd.s32 1, %s1475_s17  }
  0x75   : >> { %p165_p6 = scmp.ge.s32.totalorder %s168_s17, 128  }
  0x76   : > { %s1477_s10 = smov (%p165_p6), 0  }
  0x77   : > { %167 = sbr.rel (!%p165_p6) target bundleno = 83 (0x53), region = 89 }
  0x7e LB: >> { %1443 = dma.done.wait [#allocation3], 32  ;;  %s1479_s10 = sphi %s1477_s10, %s193_s10  }
  0x7f   : >> { %1444 = vsyncadd [#allocation3], 4294967264  ;;  %s193_s10 = sadd.s32 1, %s1479_s10  }
  0x80   : >> { %p190_p12 = scmp.ge.s32.totalorder %s193_s10, 128  }
  0x82   : > { %192 = sbr.rel (!%p190_p12) target bundleno = 126 (0x7e), region = 100 }
  0x89 PF: > { %v1217_v0 = vld [vmem:[%s1640_s0 + $0x4] ss:$8 sps:$4 sm:$0xff]   ;;  %v1221_v2 = vld [vmem:[%s1640_s0] ss:$8 sps:$4 sm:$0xff]   ;;  %v1223_v4 = vld [vmem:[%s1640_s0 + $0x14] ss:$8 sps:$4 sm:$0xff]  }
  0x8a   : > { %v1219_v1 = vld [vmem:[%s1640_s0 + $0x104] ss:$8 sps:$4 sm:$0xff]   ;;  %629 = vmatprep.subr.bf16.mxu0 %v1217_v0  ;;  %v1222_v3 = vld [vmem:[%s1640_s0 + $0x100] ss:$8 sps:$4 sm:$0xff]   ;;  %v1225_v5 = vld [vmem:[%s1640_s0 + $0x114] ss:$8 sps:$4 sm:$0xff]  }
  0x8b   : > { %742 = vmatprep.subr.bf16.mxu1 %v1219_v1  ;;  %630 = vmatpush1.bf16.xpose.msra.mxu0 %v1221_v2  ;;  %v1227_v6 = vld [vmem:[%s1640_s0 + $0x10] ss:$8 sps:$4 sm:$0xff]   ;;  %v1229_v8 = vld [vmem:[%s1640_s0 + $0x24] ss:$8 sps:$4 sm:$0xff]   ;;  %v1233_v10 = vld [vmem:[%s1640_s0 + $0x20] ss:$8 sps:$4 sm:$0xff]  }
  0x8c   : > { %743 = vmatpush1.bf16.xpose.msra.mxu1 %v1222_v3  ;;  %631 = vmatprep.subr.bf16.mxu0 %v1223_v4  ;;  %v1228_v7 = vld [vmem:[%s1640_s0 + $0x110] ss:$8 sps:$4 sm:$0xff]   ;;  %v1231_v9 = vld [vmem:[%s1640_s0 + $0x124] ss:$8 sps:$4 sm:$0xff]   ;;  %v1234_v11 = vld [vmem:[%s1640_s0 + $0x120] ss:$8 sps:$4 sm:$0xff]  }
  0x8d   : > { %744 = vmatprep.subr.bf16.mxu1 %v1225_v5  ;;  %v1235_v12 = vld [vmem:[%s1640_s0 + $0x34] ss:$8 sps:$4 sm:$0xff]   ;;  %v1239_v14 = vld [vmem:[%s1640_s0 + $0x30] ss:$8 sps:$4 sm:$0xff]   ;;  %v1241_v16 = vld [vmem:[%s1640_s0 + $0x44] ss:$8 sps:$4 sm:$0xff]  }
  0x8e   : > { %v1237_v13 = vld [vmem:[%s1640_s0 + $0x134] ss:$8 sps:$4 sm:$0xff]   ;;  %v1240_v15 = vld [vmem:[%s1640_s0 + $0x130] ss:$8 sps:$4 sm:$0xff]   ;;  %v1243_v17 = vld [vmem:[%s1640_s0 + $0x144] ss:$8 sps:$4 sm:$0xff]  }
  0x8f   : > { %v1245_v18 = vld [vmem:[%s1640_s0 + $0x40] ss:$8 sps:$4 sm:$0xff]   ;;  %v1247_v20 = vld [vmem:[%s1640_s0 + $0x54] ss:$8 sps:$4 sm:$0xff]   ;;  %v1251_v22 = vld [vmem:[%s1640_s0 + $0x50] ss:$8 sps:$4 sm:$0xff]  }
  0x90   : > { %v1246_v19 = vld [vmem:[%s1640_s0 + $0x140] ss:$8 sps:$4 sm:$0xff]   ;;  %v1249_v21 = vld [vmem:[%s1640_s0 + $0x154] ss:$8 sps:$4 sm:$0xff]   ;;  %v1252_v23 = vld [vmem:[%s1640_s0 + $0x150] ss:$8 sps:$4 sm:$0xff]  }
  0x91   : > { %v1253_v24 = vld [vmem:[%s1640_s0 + $0x64] ss:$8 sps:$4 sm:$0xff]   ;;  %v200_v27 = vld [vmem:[#allocation2 + $0x18] sm:$0xff]  ;;  %v1257_v29 = vld [vmem:[%s1640_s0 + $0x60] ss:$8 sps:$4 sm:$0xff]   ;;  %s1130_s2 = sshll.u32 %s1463_s25, 9 }
  0x92   : > { %v1255_v25 = vld [vmem:[%s1640_s0 + $0x164] ss:$8 sps:$4 sm:$0xff]   ;;  %v1258_v30 = vld [vmem:[%s1640_s0 + $0x160] ss:$8 sps:$4 sm:$0xff]   ;;  %v1259_v31 = vld [vmem:[%s1640_s0 + $0x74] ss:$8 sps:$4 sm:$0xff]   ;;  %s1800_s11 = scalar_lea.hbm %s1862_s3, %s1130_s2 }
  0x93   : > { %632 = vmatpush1.bf16.xpose.msra.mxu0 %v1227_v6  ;;  %v198_v26 = vld [vmem:[#allocation2 + $0x8] sm:$0xff]  ;;  %v1261_v32 = vld [vmem:[%s1640_s0 + $0x174] ss:$8 sps:$4 sm:$0xff]   ;;  %v1263_v33 = vld [vmem:[%s1640_s0 + $0x70] ss:$8 sps:$4 sm:$0xff]   ;;  %s920_s25 = scalar_lea.sflag [#allocation8], %s1636_s16 }
  0x94   : > { %745 = vmatpush1.bf16.xpose.msra.mxu1 %v1228_v7  ;;  %633 = vmatprep.subr.bf16.mxu0 %v1229_v8  ;;  %v230_v28 = vpack.c.bf16 %v200_v27, %v198_v26  ;;  %v1264_v34 = vld [vmem:[%s1640_s0 + $0x170] ss:$8 sps:$4 sm:$0xff]   ;;  %v1265_v35 = vld [vmem:[%s1640_s0 + $0x84] ss:$8 sps:$4 sm:$0xff]   ;;  %v1269_v37 = vld [vmem:[%s1640_s0 + $0x80] ss:$8 sps:$4 sm:$0xff]  }
  0x95   : > { %746 = vmatprep.subr.bf16.mxu1 %v1231_v9  ;;  %v1267_v36 = vld [vmem:[%s1640_s0 + $0x184] ss:$8 sps:$4 sm:$0xff]   ;;  %v1270_v38 = vld [vmem:[%s1640_s0 + $0x180] ss:$8 sps:$4 sm:$0xff]   ;;  %v1271_v39 = vld [vmem:[%s1640_s0 + $0x94] ss:$8 sps:$4 sm:$0xff]  }
  0x96   : > { %661 = vmatprep.mubr.bf16.mxu0 %v230_v28  ;;  %774 = vmatprep.mubr.bf16.mxu1 %v230_v28  ;;  %v1273_v40 = vld [vmem:[%s1640_s0 + $0x194] ss:$8 sps:$4 sm:$0xff]   ;;  %v1275_v41 = vld [vmem:[%s1640_s0 + $0x90] ss:$8 sps:$4 sm:$0xff]   ;;  %v1277_v43 = vld [vmem:[%s1640_s0 + $0xa4] ss:$8 sps:$4 sm:$0xff]  }
  0x97   : > { %v1276_v42 = vld [vmem:[%s1640_s0 + $0x190] ss:$8 sps:$4 sm:$0xff]   ;;  %v1279_v44 = vld [vmem:[%s1640_s0 + $0x1a4] ss:$8 sps:$4 sm:$0xff]   ;;  %v1281_v45 = vld [vmem:[%s1640_s0 + $0xa0] ss:$8 sps:$4 sm:$0xff]  }
  0x98   : > { %v1282_v46 = vld [vmem:[%s1640_s0 + $0x1a0] ss:$8 sps:$4 sm:$0xff]   ;;  %v1283_v47 = vld [vmem:[%s1640_s0 + $0xb4] ss:$8 sps:$4 sm:$0xff]   ;;  %v1287_v49 = vld [vmem:[%s1640_s0 + $0xb0] ss:$8 sps:$4 sm:$0xff]  }
  0x99   : > { %v1285_v48 = vld [vmem:[%s1640_s0 + $0x1b4] ss:$8 sps:$4 sm:$0xff]   ;;  %v1288_v50 = vld [vmem:[%s1640_s0 + $0x1b0] ss:$8 sps:$4 sm:$0xff]   ;;  %v1289_v51 = vld [vmem:[%s1640_s0 + $0xc4] ss:$8 sps:$4 sm:$0xff]  }
  0x9a   : > { %v1291_v52 = vld [vmem:[%s1640_s0 + $0x1c4] ss:$8 sps:$4 sm:$0xff]   ;;  %v1293_v53 = vld [vmem:[%s1640_s0 + $0xc0] ss:$8 sps:$4 sm:$0xff]   ;;  %v1295_v55 = vld [vmem:[%s1640_s0 + $0xd4] ss:$8 sps:$4 sm:$0xff]  }
  0x9b   : > { %634 = vmatpush1.bf16.xpose.msra.mxu0 %v1233_v10  ;;  %v1294_v54 = vld [vmem:[%s1640_s0 + $0x1c0] ss:$8 sps:$4 sm:$0xff]   ;;  %v1297_v56 = vld [vmem:[%s1640_s0 + $0x1d4] ss:$8 sps:$4 sm:$0xff]   ;;  %v1299_v57 = vld [vmem:[%s1640_s0 + $0xd0] ss:$8 sps:$4 sm:$0xff]  }
  0x9c   : > { %747 = vmatpush1.bf16.xpose.msra.mxu1 %v1234_v11  ;;  %635 = vmatprep.subr.bf16.mxu0 %v1235_v12  ;;  %v1300_v58 = vld [vmem:[%s1640_s0 + $0x1d0] ss:$8 sps:$4 sm:$0xff]   ;;  %v1301_v59 = vld [vmem:[%s1640_s0 + $0xe4] ss:$8 sps:$4 sm:$0xff]   ;;  %v1305_v61 = vld [vmem:[%s1640_s0 + $0xe0] ss:$8 sps:$4 sm:$0xff]  }
  0x9d   : > { %748 = vmatprep.subr.bf16.mxu1 %v1237_v13  ;;  %v1303_v60 = vld [vmem:[%s1640_s0 + $0x1e4] ss:$8 sps:$4 sm:$0xff]   ;;  %v1306_v62 = vld [vmem:[%s1640_s0 + $0x1e0] ss:$8 sps:$4 sm:$0xff]   ;;  %v1307_v63 = vld [vmem:[%s1640_s0 + $0xf4] ss:$8 sps:$4 sm:$0xff]  }
  0x9e   : > { %v1309_v0 = vld [vmem:[%s1640_s0 + $0x1f4] ss:$8 sps:$4 sm:$0xff]   ;;  %v1311_v1 = vld [vmem:[%s1640_s0 + $0xf0] ss:$8 sps:$4 sm:$0xff]   ;;  %v197_v3 = vld [vmem:[#allocation2] sm:$0xff]  ;;  %p1877_p0 = scmp.ne.s32.totalorder %s1871_s7, 0 }
  0x9f   : > { %v1312_v2 = vld [vmem:[%s1640_s0 + $0x1f0] ss:$8 sps:$4 sm:$0xff]   ;;  %v202_v5 = vld [vmem:[#allocation2 + $0x28] sm:$0xff]  ;;  %v201_v9 = vld [vmem:[#allocation2 + $0x20] sm:$0xff]  ;;  %s936_s0 = sshll.u32 %s1646_s15, 4  ;;  %s1488_s13 = smov [#allocation9]   ;;  %s1804_s0 = int_to_ptr.vmem [resolvable:$true] %s936_s0 }
  0xa0   : > { %v199_v4 = vld [vmem:[#allocation2 + $0x10] sm:$0xff]  ;;  %v204_v6 = vld [vmem:[#allocation2 + $0x38] sm:$0xff]  ;;  %v206_v11 = vld [vmem:[#allocation2 + $0x48] sm:$0xff]  ;;  %s1377_s12 = scalar_lea.vmem %s1804_s0, 8192  ;;  %s1381_s14 = sshll.u32 %s1488_s13, 4  ;;  %s1382_s14 = int_to_ptr.vmem [resolvable:$false] %s1381_s14 }
  0xa1   : > { %v229_v7 = vpack.c.bf16 %v199_v4, %v197_v3  ;;  %v232_v8 = vpack.c.bf16 %v204_v6, %v202_v5  ;;  %v203_v10 = vld [vmem:[#allocation2 + $0x30] sm:$0xff]  ;;  %v208_v12 = vld [vmem:[#allocation2 + $0x58] sm:$0xff]  ;;  %v213_v27 = vld [vmem:[#allocation2 + $0x80] sm:$0xff]  ;;  %p1378_p11 = scmp.ne.s32.totalorder %s1804_s0, %s1377_s12  ;;  %s1383_s20 = scalar_lea.vmem %s1382_s14, 16384 }
  0xa2   : > { %v231_v13 = vpack.c.bf16 %v203_v10, %v201_v9  ;;  %v215_v28 = vld [vmem:[#allocation2 + $0x90] sm:$0xff]  ;;  %p1384_p2 = scmp.lt.s32.totalorder %s1804_s0, %s1382_s14  ;;  %p1385_p5 = scmp.lt.s32.totalorder %s1383_s20, %s1377_s12 }
  0xa3   : > { %636 = vmatpush1.bf16.xpose.msra.mxu0 %v1239_v14  ;;  %v234_v14 = vpack.c.bf16 %v208_v12, %v206_v11  ;;  %p1379_p3 = pnand %p1378_p11, %p1877_p0 }
  0xa4   : > { %749 = vmatpush1.bf16.xpose.msra.mxu1 %v1240_v15  ;;  %637 = vmatprep.subr.bf16.mxu0 %v1241_v16  ;;  %v205_v15 = vld [vmem:[#allocation2 + $0x40] sm:$0xff]  ;;  %v207_v16 = vld [vmem:[#allocation2 + $0x50] sm:$0xff]  ;;  %p1386_p8 = por %p1385_p5, %p1384_p2 }
  0xa5   : > { %750 = vmatprep.subr.bf16.mxu1 %v1243_v17  ;;  %v210_v17 = vld [vmem:[#allocation2 + $0x68] sm:$0xff]  ;;  %p1380_p9 = pneg %p1379_p3 }
  0xa7   : > { %p1387_p7 = pnand %p1386_p8, %p1380_p9 }
  0xab   : > { %638 = vmatpush1.bf16.xpose.msra.mxu0 %v1245_v18  ;;  %v212_v18 = vld [vmem:[#allocation2 + $0x78] sm:$0xff] }
  0xac   : > { %751 = vmatpush1.bf16.xpose.msra.mxu1 %v1246_v19  ;;  %639 = vmatprep.subr.bf16.mxu0 %v1247_v20  ;;  %v233_v19 = vpack.c.bf16 %v207_v16, %v205_v15  ;;  %v236_v20 = vpack.c.bf16 %v212_v18, %v210_v17 }
  0xad   : > { %752 = vmatprep.subr.bf16.mxu1 %v1249_v21  ;;  %v209_v21 = vld [vmem:[#allocation2 + $0x60] sm:$0xff] }
  0xb3   : > { %640 = vmatpush1.bf16.xpose.msra.mxu0 %v1251_v22  ;;  %v211_v22 = vld [vmem:[#allocation2 + $0x70] sm:$0xff] }
  0xb4   : > { %753 = vmatpush1.bf16.xpose.msra.mxu1 %v1252_v23  ;;  %641 = vmatprep.subr.bf16.mxu0 %v1253_v24  ;;  %v214_v23 = vld [vmem:[#allocation2 + $0x88] sm:$0xff]  ;;  %v216_v24 = vld [vmem:[#allocation2 + $0x98] sm:$0xff] }
  0xb5   : > { %754 = vmatprep.subr.bf16.mxu1 %v1255_v25  ;;  %v235_v25 = vpack.c.bf16 %v211_v22, %v209_v21  ;;  %v238_v26 = vpack.c.bf16 %v216_v24, %v214_v23 }
  0xbb   : > { %642 = vmatpush1.bf16.xpose.msra.mxu0 %v1257_v29  ;;  %v218_v29 = vld [vmem:[#allocation2 + $0xa8] sm:$0xff] }
  0xbc   : > { %755 = vmatpush1.bf16.xpose.msra.mxu1 %v1258_v30  ;;  %643 = vmatprep.subr.bf16.mxu0 %v1259_v31  ;;  %v220_v30 = vld [vmem:[#allocation2 + $0xb8] sm:$0xff]  ;;  %v237_v31 = vpack.c.bf16 %v215_v28, %v213_v27 }
  0xbd   : > { %756 = vmatprep.subr.bf16.mxu1 %v1261_v32  ;;  %v240_v32 = vpack.c.bf16 %v220_v30, %v218_v29 }
  0xc3   : > { %644 = vmatpush1.bf16.xpose.msra.mxu0 %v1263_v33  ;;  %v217_v33 = vld [vmem:[#allocation2 + $0xa0] sm:$0xff] }
  0xc4   : > { %757 = vmatpush1.bf16.xpose.msra.mxu1 %v1264_v34  ;;  %645 = vmatprep.subr.bf16.mxu0 %v1265_v35  ;;  %v219_v34 = vld [vmem:[#allocation2 + $0xb0] sm:$0xff]  ;;  %v222_v35 = vld [vmem:[#allocation2 + $0xc8] sm:$0xff] }
  0xc5   : > { %758 = vmatprep.subr.bf16.mxu1 %v1267_v36  ;;  %v224_v36 = vld [vmem:[#allocation2 + $0xd8] sm:$0xff] }
  0xcb   : > { %646 = vmatpush1.bf16.xpose.msra.mxu0 %v1269_v37  ;;  %v239_v37 = vpack.c.bf16 %v219_v34, %v217_v33 }
  0xcc   : > { %759 = vmatpush1.bf16.xpose.msra.mxu1 %v1270_v38  ;;  %647 = vmatprep.subr.bf16.mxu0 %v1271_v39  ;;  %v242_v38 = vpack.c.bf16 %v224_v36, %v222_v35  ;;  %v221_v39 = vld [vmem:[#allocation2 + $0xc0] sm:$0xff] }
  0xcd   : > { %760 = vmatprep.subr.bf16.mxu1 %v1273_v40  ;;  %v223_v40 = vld [vmem:[#allocation2 + $0xd0] sm:$0xff] }
  0xd3   : > { %648 = vmatpush1.bf16.xpose.msra.mxu0 %v1275_v41  ;;  %v226_v41 = vld [vmem:[#allocation2 + $0xe8] sm:$0xff] }
  0xd4   : > { %761 = vmatpush1.bf16.xpose.msra.mxu1 %v1276_v42  ;;  %649 = vmatprep.subr.bf16.mxu0 %v1277_v43  ;;  %v228_v42 = vld [vmem:[#allocation2 + $0xf8] sm:$0xff]  ;;  %v241_v43 = vpack.c.bf16 %v223_v40, %v221_v39 }
  0xd5   : > { %762 = vmatprep.subr.bf16.mxu1 %v1279_v44  ;;  %v244_v44 = vpack.c.bf16 %v228_v42, %v226_v41 }
  0xdb   : > { %650 = vmatpush1.bf16.xpose.msra.mxu0 %v1281_v45  ;;  %v225_v45 = vld [vmem:[#allocation2 + $0xe0] sm:$0xff] }
  0xdc   : > { %763 = vmatpush1.bf16.xpose.msra.mxu1 %v1282_v46  ;;  %651 = vmatprep.subr.bf16.mxu0 %v1283_v47  ;;  %v227_v46 = vld [vmem:[#allocation2 + $0xf0] sm:$0xff] }
  0xdd   : > { %764 = vmatprep.subr.bf16.mxu1 %v1285_v48  ;;  %v243_v47 = vpack.c.bf16 %v227_v46, %v225_v45 }
  0xe3   : > { %652 = vmatpush1.bf16.xpose.msra.mxu0 %v1287_v49 }
  0xe4   : > { %765 = vmatpush1.bf16.xpose.msra.mxu1 %v1288_v50  ;;  %653 = vmatprep.subr.bf16.mxu0 %v1289_v51 }
  0xe5   : > { %766 = vmatprep.subr.bf16.mxu1 %v1291_v52 }
  0xeb   : > { %654 = vmatpush1.bf16.xpose.msra.mxu0 %v1293_v53 }
  0xec   : > { %767 = vmatpush1.bf16.xpose.msra.mxu1 %v1294_v54  ;;  %655 = vmatprep.subr.bf16.mxu0 %v1295_v55 }
  0xed   : > { %768 = vmatprep.subr.bf16.mxu1 %v1297_v56 }
  0xf3   : > { %656 = vmatpush1.bf16.xpose.msra.mxu0 %v1299_v57 }
  0xf4   : > { %769 = vmatpush1.bf16.xpose.msra.mxu1 %v1300_v58  ;;  %657 = vmatprep.subr.bf16.mxu0 %v1301_v59 }
  0xf5   : > { %770 = vmatprep.subr.bf16.mxu1 %v1303_v60 }
  0xfb   : > { %658 = vmatpush1.bf16.xpose.msra.mxu0 %v1305_v61 }
  0xfc   : > { %771 = vmatpush1.bf16.xpose.msra.mxu1 %v1306_v62  ;;  %659 = vmatprep.subr.bf16.mxu0 %v1307_v63 }
  0xfd   : > { %772 = vmatprep.subr.bf16.mxu1 %v1309_v0 }
 0x103   : > { %660 = vmatpush1.bf16.xpose.msra.mxu0 %v1311_v1 }
 0x104   : > { %773 = vmatpush1.bf16.xpose.msra.mxu1 %v1312_v2 }
 0x10a   : > { %662 = vmatmul.mubr.bf16.vlgmr.msra.gmra.mrb[0].mxu0 %v229_v7 }
 0x10b   : > { %775 = vmatmul.mubr.bf16.vlgmr.msra.gmra.mrb[0].mxu1 %v229_v7  ;;  %671 = vmatprep.mubr.bf16.mxu0 %v232_v8 }
 0x10c   : > { %784 = vmatprep.mubr.bf16.mxu1 %v232_v8 }
 0x112   : > { %672 = vmatmul.mubr.bf16.gmra.mrb[4].mxu0 %v231_v13 }
 0x113   : > { %785 = vmatmul.mubr.bf16.gmra.mrb[4].mxu1 %v231_v13  ;;  %681 = vmatprep.mubr.bf16.mxu0 %v234_v14 }
 0x114   : > { %794 = vmatprep.mubr.bf16.mxu1 %v234_v14 }
 0x11a   : > { %682 = vmatmul.mubr.bf16.gmra.mrb[8].mxu0 %v233_v19 }
 0x11b   : > { %795 = vmatmul.mubr.bf16.gmra.mrb[8].mxu1 %v233_v19  ;;  %691 = vmatprep.mubr.bf16.mxu0 %v236_v20 }
 0x11c   : > { %804 = vmatprep.mubr.bf16.mxu1 %v236_v20 }
 0x122   : > { %692 = vmatmul.mubr.bf16.gmra.mrb[12].mxu0 %v235_v25 }
 0x123   : > { %805 = vmatmul.mubr.bf16.gmra.mrb[12].mxu1 %v235_v25  ;;  %701 = vmatprep.mubr.bf16.mxu0 %v238_v26 }
 0x124   : > { %814 = vmatprep.mubr.bf16.mxu1 %v238_v26 }
 0x12a   : > { %702 = vmatmul.mubr.bf16.gmra.mrb[16].mxu0 %v237_v31 }
 0x12b   : > { %815 = vmatmul.mubr.bf16.gmra.mrb[16].mxu1 %v237_v31  ;;  %711 = vmatprep.mubr.bf16.mxu0 %v240_v32 }
 0x12c   : > { %824 = vmatprep.mubr.bf16.mxu1 %v240_v32 }
 0x132   : > { %712 = vmatmul.mubr.bf16.gmra.mrb[20].mxu0 %v239_v37 }
 0x133   : > { %825 = vmatmul.mubr.bf16.gmra.mrb[20].mxu1 %v239_v37  ;;  %721 = vmatprep.mubr.bf16.mxu0 %v242_v38 }
 0x134   : > { %834 = vmatprep.mubr.bf16.mxu1 %v242_v38 }
 0x13a   : > { %722 = vmatmul.mubr.bf16.gmra.mrb[24].mxu0 %v241_v43 }
 0x13b   : > { %835 = vmatmul.mubr.bf16.gmra.mrb[24].mxu1 %v241_v43  ;;  %731 = vmatprep.mubr.bf16.mxu0 %v244_v44 }
 0x13c   : > { %844 = vmatprep.mubr.bf16.mxu1 %v244_v44 }
 0x142   : > { %732 = vmatmul.mubr.bf16.gmra.mrb[28].mxu0 %v243_v47 }
 0x143   : > { %845 = vmatmul.mubr.bf16.gmra.mrb[28].mxu1 %v243_v47 }
 0x1dd   : > { %v663_v48 = vpop.f32.mrb[0].mxu0 }
 0x1de   : > { %v776_v49 = vpop.f32.mrb[0].mxu1  ;;  %855 = vst [vmem:[%s1646_s15] sm:$0xff] %v663_v48  ;;  %v665_v50 = vpop.f32.mrb[1].mxu0 }
 0x1df   : > { %857 = vst [vmem:[%s1646_s15 + $0x10] sm:$0xff] %v776_v49  ;;  %v778_v51 = vpop.f32.mrb[1].mxu1  ;;  %856 = vst [vmem:[%s1646_s15 + $0x8] sm:$0xff] %v665_v50  ;;  %v667_v52 = vpop.f32.mrb[2].mxu0 }
 0x1e0   : > { %858 = vst [vmem:[%s1646_s15 + $0x18] sm:$0xff] %v778_v51  ;;  %v780_v53 = vpop.f32.mrb[2].mxu1  ;;  %859 = vst [vmem:[%s1646_s15 + $0x20] sm:$0xff] %v667_v52  ;;  %v669_v54 = vpop.f32.mrb[3].mxu0 }
 0x1e1   : > { %861 = vst [vmem:[%s1646_s15 + $0x30] sm:$0xff] %v780_v53  ;;  %v782_v55 = vpop.f32.mrb[3].mxu1  ;;  %860 = vst [vmem:[%s1646_s15 + $0x28] sm:$0xff] %v669_v54 }
 0x1e2   : > { %862 = vst [vmem:[%s1646_s15 + $0x38] sm:$0xff] %v782_v55 }
 0x1e5   : > { %v673_v56 = vpop.f32.mrb[4].mxu0 }
 0x1e6   : > { %v786_v57 = vpop.f32.mrb[4].mxu1  ;;  %863 = vst [vmem:[%s1646_s15 + $0x40] sm:$0xff] %v673_v56  ;;  %v675_v58 = vpop.f32.mrb[5].mxu0 }
 0x1e7   : > { %865 = vst [vmem:[%s1646_s15 + $0x50] sm:$0xff] %v786_v57  ;;  %v788_v59 = vpop.f32.mrb[5].mxu1  ;;  %864 = vst [vmem:[%s1646_s15 + $0x48] sm:$0xff] %v675_v58  ;;  %v677_v60 = vpop.f32.mrb[6].mxu0 }
 0x1e8   : > { %866 = vst [vmem:[%s1646_s15 + $0x58] sm:$0xff] %v788_v59  ;;  %v790_v61 = vpop.f32.mrb[6].mxu1  ;;  %867 = vst [vmem:[%s1646_s15 + $0x60] sm:$0xff] %v677_v60  ;;  %v679_v62 = vpop.f32.mrb[7].mxu0 }
 0x1e9   : > { %869 = vst [vmem:[%s1646_s15 + $0x70] sm:$0xff] %v790_v61  ;;  %v792_v63 = vpop.f32.mrb[7].mxu1  ;;  %868 = vst [vmem:[%s1646_s15 + $0x68] sm:$0xff] %v679_v62 }
 0x1ea   : > { %870 = vst [vmem:[%s1646_s15 + $0x78] sm:$0xff] %v792_v63 }
 0x1ed   : > { %v683_v0 = vpop.f32.mrb[8].mxu0 }
 0x1ee   : > { %v796_v1 = vpop.f32.mrb[8].mxu1  ;;  %871 = vst [vmem:[%s1646_s15 + $0x80] sm:$0xff] %v683_v0  ;;  %v685_v2 = vpop.f32.mrb[9].mxu0 }
 0x1ef   : > { %873 = vst [vmem:[%s1646_s15 + $0x90] sm:$0xff] %v796_v1  ;;  %v798_v3 = vpop.f32.mrb[9].mxu1  ;;  %872 = vst [vmem:[%s1646_s15 + $0x88] sm:$0xff] %v685_v2  ;;  %v687_v4 = vpop.f32.mrb[10].mxu0 }
 0x1f0   : > { %874 = vst [vmem:[%s1646_s15 + $0x98] sm:$0xff] %v798_v3  ;;  %v800_v5 = vpop.f32.mrb[10].mxu1  ;;  %875 = vst [vmem:[%s1646_s15 + $0xa0] sm:$0xff] %v687_v4  ;;  %v689_v6 = vpop.f32.mrb[11].mxu0 }
 0x1f1   : > { %877 = vst [vmem:[%s1646_s15 + $0xb0] sm:$0xff] %v800_v5  ;;  %v802_v7 = vpop.f32.mrb[11].mxu1  ;;  %876 = vst [vmem:[%s1646_s15 + $0xa8] sm:$0xff] %v689_v6 }
 0x1f2   : > { %878 = vst [vmem:[%s1646_s15 + $0xb8] sm:$0xff] %v802_v7 }
 0x1f5   : > { %v693_v8 = vpop.f32.mrb[12].mxu0 }
 0x1f6   : > { %v806_v9 = vpop.f32.mrb[12].mxu1  ;;  %879 = vst [vmem:[%s1646_s15 + $0xc0] sm:$0xff] %v693_v8  ;;  %v695_v10 = vpop.f32.mrb[13].mxu0 }
 0x1f7   : > { %881 = vst [vmem:[%s1646_s15 + $0xd0] sm:$0xff] %v806_v9  ;;  %v808_v11 = vpop.f32.mrb[13].mxu1  ;;  %880 = vst [vmem:[%s1646_s15 + $0xc8] sm:$0xff] %v695_v10  ;;  %v697_v12 = vpop.f32.mrb[14].mxu0 }
 0x1f8   : > { %882 = vst [vmem:[%s1646_s15 + $0xd8] sm:$0xff] %v808_v11  ;;  %v810_v13 = vpop.f32.mrb[14].mxu1  ;;  %883 = vst [vmem:[%s1646_s15 + $0xe0] sm:$0xff] %v697_v12  ;;  %v699_v14 = vpop.f32.mrb[15].mxu0 }
 0x1f9   : > { %885 = vst [vmem:[%s1646_s15 + $0xf0] sm:$0xff] %v810_v13  ;;  %v812_v15 = vpop.f32.mrb[15].mxu1  ;;  %884 = vst [vmem:[%s1646_s15 + $0xe8] sm:$0xff] %v699_v14 }
 0x1fa   : > { %886 = vst [vmem:[%s1646_s15 + $0xf8] sm:$0xff] %v812_v15 }
 0x1fd   : > { %v703_v16 = vpop.f32.mrb[16].mxu0 }
 0x1fe   : > { %v816_v17 = vpop.f32.mrb[16].mxu1  ;;  %887 = vst [vmem:[%s1646_s15 + $0x100] sm:$0xff] %v703_v16  ;;  %v705_v18 = vpop.f32.mrb[17].mxu0 }
 0x1ff   : > { %889 = vst [vmem:[%s1646_s15 + $0x110] sm:$0xff] %v816_v17  ;;  %v818_v19 = vpop.f32.mrb[17].mxu1  ;;  %888 = vst [vmem:[%s1646_s15 + $0x108] sm:$0xff] %v705_v18  ;;  %v707_v20 = vpop.f32.mrb[18].mxu0 }
 0x200   : > { %890 = vst [vmem:[%s1646_s15 + $0x118] sm:$0xff] %v818_v19  ;;  %v820_v21 = vpop.f32.mrb[18].mxu1  ;;  %891 = vst [vmem:[%s1646_s15 + $0x120] sm:$0xff] %v707_v20  ;;  %v709_v22 = vpop.f32.mrb[19].mxu0 }
 0x201   : > { %893 = vst [vmem:[%s1646_s15 + $0x130] sm:$0xff] %v820_v21  ;;  %v822_v23 = vpop.f32.mrb[19].mxu1  ;;  %892 = vst [vmem:[%s1646_s15 + $0x128] sm:$0xff] %v709_v22 }
 0x202   : > { %894 = vst [vmem:[%s1646_s15 + $0x138] sm:$0xff] %v822_v23 }
 0x205   : > { %v713_v24 = vpop.f32.mrb[20].mxu0 }
 0x206   : > { %v826_v25 = vpop.f32.mrb[20].mxu1  ;;  %895 = vst [vmem:[%s1646_s15 + $0x140] sm:$0xff] %v713_v24  ;;  %v715_v26 = vpop.f32.mrb[21].mxu0 }
 0x207   : > { %897 = vst [vmem:[%s1646_s15 + $0x150] sm:$0xff] %v826_v25  ;;  %v828_v27 = vpop.f32.mrb[21].mxu1  ;;  %896 = vst [vmem:[%s1646_s15 + $0x148] sm:$0xff] %v715_v26  ;;  %v717_v28 = vpop.f32.mrb[22].mxu0 }
 0x208   : > { %898 = vst [vmem:[%s1646_s15 + $0x158] sm:$0xff] %v828_v27  ;;  %v830_v29 = vpop.f32.mrb[22].mxu1  ;;  %899 = vst [vmem:[%s1646_s15 + $0x160] sm:$0xff] %v717_v28  ;;  %v719_v30 = vpop.f32.mrb[23].mxu0 }
 0x209   : > { %901 = vst [vmem:[%s1646_s15 + $0x170] sm:$0xff] %v830_v29  ;;  %v832_v31 = vpop.f32.mrb[23].mxu1  ;;  %900 = vst [vmem:[%s1646_s15 + $0x168] sm:$0xff] %v719_v30 }
 0x20a   : > { %902 = vst [vmem:[%s1646_s15 + $0x178] sm:$0xff] %v832_v31 }
 0x20d   : > { %v723_v32 = vpop.f32.mrb[24].mxu0 }
 0x20e   : > { %v836_v33 = vpop.f32.mrb[24].mxu1  ;;  %903 = vst [vmem:[%s1646_s15 + $0x180] sm:$0xff] %v723_v32  ;;  %v725_v34 = vpop.f32.mrb[25].mxu0 }
 0x20f   : > { %905 = vst [vmem:[%s1646_s15 + $0x190] sm:$0xff] %v836_v33  ;;  %v838_v35 = vpop.f32.mrb[25].mxu1  ;;  %904 = vst [vmem:[%s1646_s15 + $0x188] sm:$0xff] %v725_v34  ;;  %v727_v36 = vpop.f32.mrb[26].mxu0 }
 0x210   : > { %906 = vst [vmem:[%s1646_s15 + $0x198] sm:$0xff] %v838_v35  ;;  %v840_v37 = vpop.f32.mrb[26].mxu1  ;;  %907 = vst [vmem:[%s1646_s15 + $0x1a0] sm:$0xff] %v727_v36  ;;  %v729_v38 = vpop.f32.mrb[27].mxu0 }
 0x211   : > { %909 = vst [vmem:[%s1646_s15 + $0x1b0] sm:$0xff] %v840_v37  ;;  %v842_v39 = vpop.f32.mrb[27].mxu1  ;;  %908 = vst [vmem:[%s1646_s15 + $0x1a8] sm:$0xff] %v729_v38 }
 0x212   : > { %910 = vst [vmem:[%s1646_s15 + $0x1b8] sm:$0xff] %v842_v39 }
 0x215   : > { %v733_v40 = vpop.f32.mrb[28].mxu0 }
 0x216   : > { %v846_v41 = vpop.f32.mrb[28].mxu1  ;;  %911 = vst [vmem:[%s1646_s15 + $0x1c0] sm:$0xff] %v733_v40  ;;  %v735_v42 = vpop.f32.mrb[29].mxu0 }
 0x217   : > { %913 = vst [vmem:[%s1646_s15 + $0x1d0] sm:$0xff] %v846_v41  ;;  %v848_v43 = vpop.f32.mrb[29].mxu1  ;;  %912 = vst [vmem:[%s1646_s15 + $0x1c8] sm:$0xff] %v735_v42  ;;  %v737_v44 = vpop.f32.mrb[30].mxu0 }
 0x218   : > { %914 = vst [vmem:[%s1646_s15 + $0x1d8] sm:$0xff] %v848_v43  ;;  %v850_v45 = vpop.f32.mrb[30].mxu1  ;;  %915 = vst [vmem:[%s1646_s15 + $0x1e0] sm:$0xff] %v737_v44  ;;  %v739_v46 = vpop.f32.mrb[31].mxu0 }
 0x219   : > { %917 = vst [vmem:[%s1646_s15 + $0x1f0] sm:$0xff] %v850_v45  ;;  %v852_v47 = vpop.f32.mrb[31].mxu1  ;;  %916 = vst [vmem:[%s1646_s15 + $0x1e8] sm:$0xff] %v739_v46 }
 0x21a   : > { %918 = vst [vmem:[%s1646_s15 + $0x1f8] sm:$0xff] %v852_v47 }
 0x21b   : > { %1390 = shalt.err (!%p1387_p7)
}
 0x21c   : > { %s1391_s15 = scalar_lea.hbm %s1800_s11, 8192  ;;  %s1395_s28 = scalar_lea.hbm %s1862_s3, 16384 }
 0x21d   : > { %p1392_p10 = scmp.ne.s32.totalorder %s1800_s11, %s1391_s15  ;;  %p1396_p4 = scmp.lt.u32.totalorder %s1800_s11, %s1862_s3 }
 0x21e   : > { %p1397_p6 = scmp.lt.u32.totalorder %s1395_s28, %s1391_s15  ;;  %p1399_p11 = scmp.lt.u32.totalorder %s1391_s15, %s1800_s11 }
 0x21f   : > { %p1393_p13 = pnand %p1392_p10, %p1877_p0 }
 0x220   : > { %p1398_p12 = por %p1397_p6, %p1396_p4 }
 0x221   : > { %p1394_p1 = pneg %p1393_p13 }
 0x222   : > { %p1400_p3 = por %p1399_p11, %p1398_p12 }
 0x224   : > { %p1401_p9 = pnand %p1400_p3, %p1394_p1 }
 0x226   : > { %1404 = shalt.err (!%p1401_p9)
}
 0x227   : > { %s1489_s30 = smov 512   ;;  %s1490_s4 = smov 1024  }
 0x228   : > { %s1491_s26 = smov 32  }
 0x229   : > { %1133 = dma.vmem_to_hbm [thread:$0]  (%p1877_p0), %s1804_s0, 8192, %s1800_s11, %s920_s25, %s1489_s30, %s1490_s4, %s1491_s26  }
 0x22a PF: > { %s951_s8 = sand.u32 1, %s1451_s22   ;;  %p1878_p2 = scmp.ne.s32.totalorder %s1873_s9, 0 }
 0x22b   : > { %p1879_p5 = scmp.ge.s32.totalorder %s1471_s27, 2  ;;  %s952_s29 = scalar_lea.sflag [#allocation8], %s951_s8 }
 0x22d   : > { %p1140_p8 = pnand %p1879_p5, %p1878_p2 }
 0x22f   : > { %1446 = dma.done.wait (!%p1140_p8), %s952_s29, 8192  }
 0x230   : > { %1448 = vsyncadd (!%p1140_p8), %s952_s29, 4294959104  ;;  %s23_s27 = sadd.s32 1, %s1471_s27   ;;  %s1880_s10 = sld [smem:[#allocation17_spill]] }
 0x231   : > { %p20_p7 = scmp.ge.s32.totalorder %s23_s27, 4   ;;  %s1881_s25 = sld [smem:[#allocation15_spill]] }
 0x232   : > { %s1882_s26 = sld [smem:[#allocation16_spill]]  ;;  %s1883_s22 = smov %s1455_s23 }
 0x233   : > { %s1884_s23 = smov %s1459_s24  ;;  %22 = sbr.rel (!%p20_p7) target bundleno = 18 (0x12), region = 111 }
 0x236   : > { %s1885_s24 = smov %s1880_s10 }
 0x23a   :  { %957 = vsyncpa [#allocation7], 1 }
 0x23b   :  { %959 = vsyncpa [#allocation7 + $0x1], 1 }
 0x23c   :  { %960 = vsyncpa [#allocation8], 1 }
 0x23d   :  { %962 = vsyncpa [#allocation8 + $0x1], 1 }
 0x23e   :  { %963 = vsyncmov [#allocation3] }
 0x241   :  { %s964_s7 = vpop.sfrf %963 }
 0x242   :  { %p1127_p0 = scmp.ne.s32.totalorder %s964_s7, 0 }
 0x244   :  { %968 = shalt.err (%p1127_p0)  }

</bundles_post_ra>
